<compile_context>
chip_gen: v7x
topology: tpu7x:2x2x1
jax: 0.10.0
libtpu: 0.0.40
codegen_flags: <defaults>
</compile_context>

<pallas_src>
import jax
import jax.numpy as jnp
from jax.experimental import pallas as pl
from jax.experimental.pallas import tpu as pltpu


# ---------------------------------------------------------------------------
# Kernel body: pure copy with static lane-offset sub-slices.
# ---------------------------------------------------------------------------
def _channel_split_kernel(x_ref, o_ref):
    # x_ref: (Cb, Ht, W)           -- chunk of fused (N*C) channels, full W
    # o_ref: (Cb, split, Ht, Wc)   -- same chunk, split written as a new axis
    split = o_ref.shape[1]
    Wc = o_ref.shape[3]
    for s in range(split):  # split is small & static -> unrolled copies
        o_ref[:, s, :, :] = x_ref[:, :, s * Wc:(s + 1) * Wc]


# ---------------------------------------------------------------------------
# Hardware queries (best effort; conservative fallbacks keep everything legal).
# ---------------------------------------------------------------------------
def _tpu_info_int(names, default):
    try:
        info = pltpu.get_tpu_info()
    except Exception:
        return default
    for name in names:
        v = getattr(info, name, None)
        if isinstance(v, int) and v > 0:
            return v
    return default


def _vmem_capacity_bytes() -> int:
    # Fallback is the v7x per-core capacity (the smallest of the targets).
    return _tpu_info_int(("vmem_capacity_bytes",), 64 * 1024 * 1024)


def _num_tensorcores() -> int:
    v = _tpu_info_int(("num_cores", "num_tensorcores", "tensorcore_count",
                       "cores_per_chip", "num_cores_per_chip"), 0)
    if v:
        return v
    try:
        d = jax.devices()[0]
        for name in ("num_cores", "core_count"):
            v = getattr(d, name, None)
            if isinstance(v, int) and v > 0:
                return v
    except Exception:
        pass
    return 1


# ---------------------------------------------------------------------------
# Tile-size helpers.
# ---------------------------------------------------------------------------
def _pick_channel_chunk(nc: int, cap: int, ncores: int) -> int:
    """Largest divisor of nc <= cap; prefer one leaving (nc // d) % ncores == 0
    so the leading grid axis can be sharded across TensorCores."""
    cap = int(max(1, min(nc, cap)))
    divs = [d for d in range(1, cap + 1) if nc % d == 0]
    divs.sort(reverse=True)
    if ncores > 1:
        for d in divs:
            if (nc // d) % ncores == 0:
                return d
    return divs[0]


def _row_tile(h: int, cap: int, align: int) -> int:
    """Largest divisor of h <= cap, preferring sublane-aligned ones.  Never
    falls back to the full dim, so the VMEM budget is always respected."""
    cap = int(max(1, min(h, cap)))
    for d in range(cap, 0, -1):
        if h % d == 0 and d % align == 0:
            return d
    for d in range(cap, 0, -1):
        if h % d == 0:
            return d
    return 1


# ---------------------------------------------------------------------------
# Wrapper.
# ---------------------------------------------------------------------------
def channel_split(x: jax.Array, split: int, *,
                  target_block_bytes: int = 8 * 1024 * 1024) -> jax.Array:
    N, C, H, W = x.shape
    if W % split != 0:
        raise ValueError("W must be divisible by split")
    Wc = W // split
    NC = N * C
    itemsize = jnp.dtype(x.dtype).itemsize

    # Sublane packing granularity: 8 rows f32, 16 bf16, 32 int8.
    min_sublane = max(1, 32 // itemsize)

    # ---- per-generation VMEM budget -------------------------------------
    vmem_cap = _vmem_capacity_bytes()               # 64 MiB v7x, 128 MiB v5e/v6e
    scoped_cap = max(16 << 20, vmem_cap - (8 << 20))   # headroom below physical
    block_cap = max(1 << 20, (scoped_cap - (2 << 20)) // 4)  # 2x-buffered in+out
    target_block = min(int(target_block_bytes), block_cap)

    ncores = _num_tensorcores()

    # ---- tile sizing: ~target_block bytes moved per grid step -----------
    chan_bytes = H * W * itemsize                   # one fused-channel plane
    if chan_bytes <= target_block:
        Ht = H                                      # full contiguous planes
        Cb = _pick_channel_chunk(NC, target_block // max(chan_bytes, 1), ncores)
    elif chan_bytes <= block_cap:
        Ht = H                                      # still one contiguous plane
        Cb = 1
    else:
        Cb = 1                                      # plane exceeds budget: tile H
        max_rows = max(1, block_cap // (W * itemsize))
        Ht = _row_tile(H, max_rows, min_sublane)

    grid = (NC // Cb, H // Ht)

    # Double-buffered input + output blocks (equal sizes) + compiler headroom.
    block_bytes = Cb * Ht * W * itemsize
    need = 4 * block_bytes + (2 << 20)
    vmem_limit = int(min(vmem_cap - (4 << 20), max(need, 64 << 20)))

    # Shard the leading (independent-blocks) axis across TensorCores when
    # possible; otherwise plain "parallel" (no behaviour change on 1-TC chips).
    if ncores > 1 and grid[0] % ncores == 0:
        lead_sem = pltpu.CORE_PARALLEL
    else:
        lead_sem = pltpu.PARALLEL

    # Fuse N and C (contiguous reshape, free metadata under jit).
    x2 = x.reshape(NC, H, W)

    out4 = pl.pallas_call(
        _channel_split_kernel,
        out_shape=jax.ShapeDtypeStruct((NC, split, H, Wc), x.dtype),
        grid_spec=pltpu.PrefetchScalarGridSpec(
            num_scalar_prefetch=0,
            grid=grid,
            in_specs=[
                # (Cb, Ht, W): last two dims are (aligned-or-full H tile, full W).
                pl.BlockSpec((Cb, Ht, W), lambda i, h: (i, h, 0)),
            ],
            # (Cb, split, Ht, Wc): last two dims (aligned-or-full H tile, full Wc).
            out_specs=pl.BlockSpec((Cb, split, Ht, Wc),
                                   lambda i, h: (i, 0, h, 0)),
        ),
        compiler_params=pltpu.CompilerParams(
            dimension_semantics=(lead_sem, pltpu.ARBITRARY),
            vmem_limit_bytes=vmem_limit,
        ),
        cost_estimate=pl.CostEstimate(
            flops=0,
            transcendentals=0,
            bytes_accessed=2 * N * C * H * W * itemsize,
        ),
    )(x2)

    # (NC, split, H, Wc) -> (N, C*split, H, Wc): contiguous, free metadata.
    return out4.reshape(N, C * split, H, Wc)


def channel_split_ref(x: jax.Array, split: int) -> jax.Array:
    # Pure-JAX reference mirroring the PyTorch forward.
    N, C, H, W = x.shape
    Wc = W // split
    return (
        x.reshape(N, C, H, split, Wc)
        .transpose(0, 1, 3, 2, 4)
        .reshape(N, C * split, H, Wc)
    )


if __name__ == "__main__":
    key = jax.random.PRNGKey(0)
    N, C, H, W = 2, 4, 16, 16
    split = 2

    x = jax.random.normal(key, (N, C, H, W), dtype=jnp.float32)

    csplit = jax.jit(channel_split, static_argnums=1)
    out = jax.block_until_ready(csplit(x, split))

    ref = channel_split_ref(x, split)
    assert out.shape == (N, C * split, H, W // split), out.shape
    assert out.dtype == x.dtype
    assert jnp.array_equal(out, ref), "Pallas ChannelSplit mismatch vs reference"

    print("KERNEL_OK")
</pallas_src>

<mosaic_0001>
module attributes {stable_mosaic.version = 11 : i64} {
  func.func @_channel_split_kernel(%arg0: i32, %arg1: i32, %arg2: memref<8x16x16xf32, #tpu.memory_space<vmem>>, %arg3: memref<8x2x16x8xf32, #tpu.memory_space<vmem>>) attributes {dimension_semantics = [#tpu.dimension_semantics<parallel>, #tpu.dimension_semantics<arbitrary>], iteration_bounds = array<i64: 1, 1>, scalar_prefetch = 0 : i64, scratch_operands = 0 : i64, tpu.core_type = #tpu.core_type<tc>, window_params = [{transform_indices = @transform_0, window_bounds = array<i64: 8, 16, 16>}, {transform_indices = @transform_1, window_bounds = array<i64: 8, 2, 16, 8>}]} {
    %c0 = arith.constant 0 : index
    %c0_0 = arith.constant 0 : index
    %c0_1 = arith.constant 0 : index
    %0 = vector.load %arg2[%c0, %c0_0, %c0_1] : memref<8x16x16xf32, #tpu.memory_space<vmem>>, vector<8x16x8xf32>
    %c0_2 = arith.constant 0 : index
    %c0_3 = arith.constant 0 : index
    %c0_4 = arith.constant 0 : index
    %c0_5 = arith.constant 0 : index
    %1 = vector.load %arg3[%c0_2, %c0_3, %c0_4, %c0_5] : memref<8x2x16x8xf32, #tpu.memory_space<vmem>>, vector<8x1x16x8xf32>
    %2 = vector.shape_cast %1 : vector<8x1x16x8xf32> to vector<8x16x8xf32>
    %3 = vector.shape_cast %0 : vector<8x16x8xf32> to vector<8x1x16x8xf32>
    tpu.vector_store %arg3[%c0_2, %c0_3, %c0_4, %c0_5], %3 {strides = array<i32>} : memref<8x2x16x8xf32, #tpu.memory_space<vmem>>, vector<8x1x16x8xf32>,
    %c0_6 = arith.constant 0 : index
    %c0_7 = arith.constant 0 : index
    %c8 = arith.constant 8 : index
    %4 = vector.load %arg2[%c0_6, %c0_7, %c8] : memref<8x16x16xf32, #tpu.memory_space<vmem>>, vector<8x16x8xf32>
    %c0_8 = arith.constant 0 : index
    %c1 = arith.constant 1 : index
    %c0_9 = arith.constant 0 : index
    %c0_10 = arith.constant 0 : index
    %5 = vector.load %arg3[%c0_8, %c1, %c0_9, %c0_10] : memref<8x2x16x8xf32, #tpu.memory_space<vmem>>, vector<8x1x16x8xf32>
    %6 = vector.shape_cast %5 : vector<8x1x16x8xf32> to vector<8x16x8xf32>
    %7 = vector.shape_cast %4 : vector<8x16x8xf32> to vector<8x1x16x8xf32>
    tpu.vector_store %arg3[%c0_8, %c1, %c0_9, %c0_10], %7 {strides = array<i32>} : memref<8x2x16x8xf32, #tpu.memory_space<vmem>>, vector<8x1x16x8xf32>,
    return
  }
  func.func @transform_0(%arg0: i32, %arg1: i32) -> (i32, i32, i32) {
    %c0_i32 = arith.constant 0 : i32
    %c0_i32_0 = arith.constant 0 : i32
    return %arg0, %arg1, %c0_i32 : i32, i32, i32
  }
  func.func @transform_1(%arg0: i32, %arg1: i32) -> (i32, i32, i32, i32) {
    %c0_i32 = arith.constant 0 : i32
    %c0_i32_0 = arith.constant 0 : i32
    %c0_i32_1 = arith.constant 0 : i32
    return %arg0, %c0_i32, %arg1, %c0_i32_0 : i32, i32, i32, i32
  }
}

</mosaic_0001>

<bundles_post_ra>
// kernel: channel_split.1
= control target key start
LH: loop header
LB: loop body
LE: loop exit
PB: predicated region body
PF: predicated region fallthrough
CT: control target
= control target key end

     0   :  { %6 = vsyncpa [#allocation3], 0  ;;  %s201_s6 = smov [#allocation2]   ;;  %s371_s0 = inlined_call_operand.hbm [shape: f32[8,16,16], index: 0, kind: input, shape index: {}]   ;;  %s372_s1 = inlined_call_operand.vmem [shape: f32[8,2,16,8], index: 1, kind: output, shape index: {}]  }
   0x1   :  { %s12_s7 = sshll.u32 %s201_s6, 4  ;;  %s177_s10 = scalar_lea.hbm %s371_s0, 2048  ;;  %s13_s7 = int_to_ptr.vmem [resolvable:$true] %s12_s7 }
   0x2   :  { %p178_p0 = scmp.ne.s32.totalorder %s371_s0, %s177_s10  ;;  %p181_p1 = scmp.lt.u32.totalorder %s177_s10, %s371_s0 }
   0x4   :  { %p183_p2 = pnand %p181_p1, %p178_p0 }
   0x6   :  { %186 = shalt.err (!%p183_p2)
}
   0x7   :  { %s187_s15 = scalar_lea.vmem %s13_s7, 2048  ;;  %p192_p4 = scmp.lt.s32.totalorder %s13_s7, %s13_s7 }
   0x8   :  { %p188_p3 = scmp.ne.s32.totalorder %s13_s7, %s187_s15  ;;  %p193_p5 = scmp.lt.s32.totalorder %s187_s15, %s187_s15 }
   0xa   :  { %p194_p6 = por %p193_p5, %p192_p4 }
   0xc   :  { %p195_p7 = pnand %p194_p6, %p188_p3 }
   0xe   :  { %198 = shalt.err (!%p195_p7)
}
   0xf   :  { %s202_s16 = smov 128   ;;  %s203_s17 = smov 8  }
  0x10   :  { %18 = dma.hbm_to_vmem [thread:$0]  %s371_s0, 2048, %s13_s7, [#allocation3], %s202_s16, %s202_s16, %s203_s17  }
  0x11   :  { %199 = dma.done.wait [#allocation3], 2048  }
  0x12   :  { %200 = vsyncadd [#allocation3], 4294965248  ;;  %v57_v0 = vld [vmem:[#allocation2 + $0x10] sm:$0xff]  ;;  %v55_v1 = vld [vmem:[#allocation2] sm:$0xff]  ;;  %vm38_vm0 = vcmask 64512   ;;  %s204_s20 = smov 120  }
  0x13   :  { %v58_v2 = vld [vmem:[#allocation2 + $0x18] sm:$0xff]  ;;  %91 = vrot.lane.b32.xlu1 %v57_v0, %s204_s20  ;;  %87 = vrot.lane.b32.xlu0 %v55_v1, %s204_s20  ;;  %v56_v3 = vld [vmem:[#allocation2 + $0x8] sm:$0xff]  ;;  %v59_v5 = vld [vmem:[#allocation2 + $0x20] sm:$0xff]  ;;  %39 = vst.msk [vmem:[%s372_s1] sm:$0xff] %vm38_vm0, %v55_v1 }
  0x14   :  { %v60_v4 = vld [vmem:[#allocation2 + $0x28] sm:$0xff]  ;;  %41 = vst.msk [vmem:[%s372_s1 + $0x20] sm:$0xff] %vm38_vm0, %v57_v0  ;;  %42 = vst.msk [vmem:[%s372_s1 + $0x28] sm:$0xff] %vm38_vm0, %v58_v2  ;;  %v62_v6 = vld [vmem:[#allocation2 + $0x38] sm:$0xff] }
  0x15   :  { %v61_v7 = vld [vmem:[#allocation2 + $0x30] sm:$0xff]  ;;  %v64_v8 = vld [vmem:[#allocation2 + $0x48] sm:$0xff]  ;;  %40 = vst.msk [vmem:[%s372_s1 + $0x8] sm:$0xff] %vm38_vm0, %v56_v3  ;;  %43 = vst.msk [vmem:[%s372_s1 + $0x40] sm:$0xff] %vm38_vm0, %v59_v5 }
  0x16   :  { %44 = vst.msk [vmem:[%s372_s1 + $0x48] sm:$0xff] %vm38_vm0, %v60_v4  ;;  %v63_v9 = vld [vmem:[#allocation2 + $0x40] sm:$0xff]  ;;  %v66_v10 = vld [vmem:[#allocation2 + $0x58] sm:$0xff]  ;;  %v65_v11 = vld [vmem:[#allocation2 + $0x50] sm:$0xff] }
  0x17   :  { %45 = vst.msk [vmem:[%s372_s1 + $0x60] sm:$0xff] %vm38_vm0, %v61_v7  ;;  %46 = vst.msk [vmem:[%s372_s1 + $0x68] sm:$0xff] %vm38_vm0, %v62_v6  ;;  %v68_v12 = vld [vmem:[#allocation2 + $0x68] sm:$0xff]  ;;  %v67_v13 = vld [vmem:[#allocation2 + $0x60] sm:$0xff]  ;;  %93 = vrot.lane.b32.xlu1 %v58_v2, %s204_s20  ;;  %89 = vrot.lane.b32.xlu0 %v56_v3, %s204_s20 }
  0x18   :  { %48 = vst.msk [vmem:[%s372_s1 + $0x88] sm:$0xff] %vm38_vm0, %v64_v8  ;;  %v70_v14 = vld [vmem:[#allocation2 + $0x78] sm:$0xff]  ;;  %47 = vst.msk [vmem:[%s372_s1 + $0x80] sm:$0xff] %vm38_vm0, %v63_v9  ;;  %v69_v15 = vld [vmem:[#allocation2 + $0x70] sm:$0xff] }
  0x19   :  { %49 = vst.msk [vmem:[%s372_s1 + $0xa0] sm:$0xff] %vm38_vm0, %v65_v11  ;;  %50 = vst.msk [vmem:[%s372_s1 + $0xa8] sm:$0xff] %vm38_vm0, %v66_v10 }
  0x1a   :  { %51 = vst.msk [vmem:[%s372_s1 + $0xc0] sm:$0xff] %vm38_vm0, %v67_v13  ;;  %52 = vst.msk [vmem:[%s372_s1 + $0xc8] sm:$0xff] %vm38_vm0, %v68_v12 }
  0x1b   :  { %54 = vst.msk [vmem:[%s372_s1 + $0xe8] sm:$0xff] %vm38_vm0, %v70_v14  ;;  %53 = vst.msk [vmem:[%s372_s1 + $0xe0] sm:$0xff] %vm38_vm0, %v69_v15  ;;  %97 = vrot.lane.b32.xlu1 %v60_v4, %s204_s20  ;;  %95 = vrot.lane.b32.xlu0 %v59_v5, %s204_s20 }
  0x1f   :  { %101 = vrot.lane.b32.xlu1 %v62_v6, %s204_s20  ;;  %99 = vrot.lane.b32.xlu0 %v61_v7, %s204_s20 }
  0x23   :  { %105 = vrot.lane.b32.xlu1 %v64_v8, %s204_s20  ;;  %103 = vrot.lane.b32.xlu0 %v63_v9, %s204_s20 }
  0x27   :  { %109 = vrot.lane.b32.xlu1 %v66_v10, %s204_s20  ;;  %107 = vrot.lane.b32.xlu0 %v65_v11, %s204_s20 }
  0x2b   :  { %113 = vrot.lane.b32.xlu1 %v68_v12, %s204_s20  ;;  %111 = vrot.lane.b32.xlu0 %v67_v13, %s204_s20 }
  0x2f   :  { %117 = vrot.lane.b32.xlu1 %v70_v14, %s204_s20  ;;  %115 = vrot.lane.b32.xlu0 %v69_v15, %s204_s20 }
  0x85   :  { %v92_v16 = vpop.permute.xlu1 %91  ;;  %v88_v17 = vpop.permute.xlu0 %87 }
  0x86   :  { %159 = vst.msk [vmem:[%s372_s1 + $0x30] sm:$0xff] %vm38_vm0, %v92_v16  ;;  %157 = vst.msk [vmem:[%s372_s1 + $0x10] sm:$0xff] %vm38_vm0, %v88_v17 }
  0x89   :  { %v94_v18 = vpop.permute.xlu1 %93  ;;  %v90_v19 = vpop.permute.xlu0 %89 }
  0x8a   :  { %160 = vst.msk [vmem:[%s372_s1 + $0x38] sm:$0xff] %vm38_vm0, %v94_v18  ;;  %158 = vst.msk [vmem:[%s372_s1 + $0x18] sm:$0xff] %vm38_vm0, %v90_v19 }
  0x8d   :  { %v98_v20 = vpop.permute.xlu1 %97  ;;  %v96_v21 = vpop.permute.xlu0 %95 }
  0x8e   :  { %162 = vst.msk [vmem:[%s372_s1 + $0x58] sm:$0xff] %vm38_vm0, %v98_v20  ;;  %161 = vst.msk [vmem:[%s372_s1 + $0x50] sm:$0xff] %vm38_vm0, %v96_v21 }
  0x91   :  { %v102_v22 = vpop.permute.xlu1 %101  ;;  %v100_v23 = vpop.permute.xlu0 %99 }
  0x92   :  { %164 = vst.msk [vmem:[%s372_s1 + $0x78] sm:$0xff] %vm38_vm0, %v102_v22  ;;  %163 = vst.msk [vmem:[%s372_s1 + $0x70] sm:$0xff] %vm38_vm0, %v100_v23 }
  0x95   :  { %v106_v24 = vpop.permute.xlu1 %105  ;;  %v104_v25 = vpop.permute.xlu0 %103 }
  0x96   :  { %166 = vst.msk [vmem:[%s372_s1 + $0x98] sm:$0xff] %vm38_vm0, %v106_v24  ;;  %165 = vst.msk [vmem:[%s372_s1 + $0x90] sm:$0xff] %vm38_vm0, %v104_v25 }
  0x99   :  { %v110_v26 = vpop.permute.xlu1 %109  ;;  %v108_v27 = vpop.permute.xlu0 %107 }
  0x9a   :  { %168 = vst.msk [vmem:[%s372_s1 + $0xb8] sm:$0xff] %vm38_vm0, %v110_v26  ;;  %167 = vst.msk [vmem:[%s372_s1 + $0xb0] sm:$0xff] %vm38_vm0, %v108_v27 }
  0x9d   :  { %v114_v28 = vpop.permute.xlu1 %113  ;;  %v112_v29 = vpop.permute.xlu0 %111 }
  0x9e   :  { %170 = vst.msk [vmem:[%s372_s1 + $0xd8] sm:$0xff] %vm38_vm0, %v114_v28  ;;  %169 = vst.msk [vmem:[%s372_s1 + $0xd0] sm:$0xff] %vm38_vm0, %v112_v29 }
  0xa1   :  { %v118_v30 = vpop.permute.xlu1 %117  ;;  %v116_v31 = vpop.permute.xlu0 %115 }
  0xa2   :  { %172 = vst.msk [vmem:[%s372_s1 + $0xf8] sm:$0xff] %vm38_vm0, %v118_v30  ;;  %171 = vst.msk [vmem:[%s372_s1 + $0xf0] sm:$0xff] %vm38_vm0, %v116_v31 }
  0xa3   :  { %156 = vsyncpa [#allocation3], 1 }

</bundles_post_ra>
